<compile_context>
chip_gen: v5e
topology: v5e:2x2
jax: 0.10.0
libtpu: 0.0.40
codegen_flags: <defaults>
</compile_context>

<pallas_src>
import functools
import math

import jax
import jax.numpy as jnp
from jax.experimental import pallas as pl
from jax.experimental.pallas import tpu as pltpu


def _abs_pow(x, p):
    """|x|^p elementwise using only VPU multiplies for integer p."""
    if p == 1:
        return jnp.abs(x)
    if p == 2:
        return x * x
    if isinstance(p, int) and p > 0:
        base = jnp.abs(x)
        out = base
        for _ in range(p - 1):
            out = out * base
        return out
    # Non-integer p fallback (rare): lowers to exp/log on the EUP.
    return jnp.abs(x) ** p


def _tpu_vmem_bytes():
    """Per-core VMEM capacity; conservative 64 MiB fallback (v7x-safe)."""
    try:
        v = int(getattr(pltpu.get_tpu_info(), "vmem_capacity_bytes", 0))
        if v > 0:
            return v
    except Exception:
        pass
    return 64 * 1024 * 1024


def _tpu_num_tensorcores():
    """TensorCores per chip; conservative 1 if the query isn't available."""
    try:
        info = pltpu.get_tpu_info()
        for name in ("num_cores", "core_count", "num_tensorcores",
                     "tensor_core_count", "cores_per_chip",
                     "num_cores_per_chip", "tensorcores_per_chip"):
            v = getattr(info, name, None)
            if v is not None and int(v) >= 1:
                return int(v)
    except Exception:
        pass
    return 1


def _sum_pow_kernel(*refs, p, n, row_tile, num_emb, nb_per_split, nb_total,
                    needs_mask, two_axes):
    """Accumulates sum(|x|^p) per embedding over the row-block grid."""
    x_refs = refs[:num_emb]
    o_ref = refs[num_emb]                 # SMEM (1, num_emb) partial sums
    acc_refs = refs[num_emb + 1:]         # num_emb x VMEM (8, d) f32 accumulators

    if two_axes:
        c = pl.program_id(0)              # TensorCore split axis (core-parallel)
        j = pl.program_id(1)              # row-block reduction axis ("arbitrary")
        gb = c * nb_per_split + j         # global row-block index
    else:
        j = pl.program_id(0)
        gb = j

    @pl.when(j == 0)
    def _():
        for a in acc_refs:
            a[...] = jnp.zeros_like(a)

    d = x_refs[0].shape[-1]

    def accumulate(masked):
        if masked:
            # (row_tile, 1) sublane iota only; broadcast inside the where.
            row0 = gb * row_tile
            rows = jax.lax.broadcasted_iota(jnp.int32, (row_tile, 1), 0) + row0
            valid = rows < n
        for k in range(num_emb):
            x = x_refs[k][...]
            if masked:
                # Mask BEFORE |x|^p: garbage/NaN padding never reaches the acc.
                x = jnp.where(valid, x, jnp.zeros_like(x))
            xp = _abs_pow(x.astype(jnp.float32), p)
            # Pure vreg adds over the untiled leading axis; no per-step XLU
            # sublane reduce, accumulator stays a fully-used (8, d) slab.
            acc_refs[k][...] += jnp.sum(xp.reshape(row_tile // 8, 8, d), axis=0)

    if needs_mask:
        # Mask is only ever needed on the single tail block; interior blocks
        # take the unmasked (pure load+mul+add) path.
        @pl.when(gb < nb_total - 1)
        def _():
            accumulate(masked=False)

        @pl.when(gb == nb_total - 1)
        def _():
            accumulate(masked=True)
    else:
        accumulate(masked=False)

    @pl.when(j == nb_per_split - 1)
    def _():
        # Single cross-lane + sublane reduce + scalar store, once per split.
        for k in range(num_emb):
            o_ref[0, k] = jnp.sum(acc_refs[k][...])


def _sum_abs_pow(xs, p, max_rows_per_block=None):
    """sum(|x|^p) over all elements, per array. All xs share shape & dtype.

    Returns a (len(xs),) float32 array of per-embedding sums.
    """
    num_emb = len(xs)
    n, d = xs[0].shape
    itemsize = jnp.dtype(xs[0].dtype).itemsize

    # Sublane packing multiple: 8 for f32, 16 for bf16, 32 for int8.
    sub = max(8, 32 // max(1, itemsize))

    # Chip-aware VMEM budget.
    vmem = _tpu_vmem_bytes()
    if vmem >= 96 * 1024 * 1024:          # v5e / v6e: 128 MiB physical per TC
        vmem_limit = 64 * 1024 * 1024
        agg_budget = 48 * 1024 * 1024     # double-buffered input aggregate
        per_block_cap = 8 * 1024 * 1024
    else:                                  # v7x: 64 MiB per TC (or unknown)
        vmem_limit = 48 * 1024 * 1024
        agg_budget = 28 * 1024 * 1024
        per_block_cap = (8 if num_emb <= 2 else 4) * 1024 * 1024

    per_block_budget = max(1, min(per_block_cap, agg_budget // (2 * num_emb)))
    rt = max(sub, (per_block_budget // max(1, d * itemsize)) // sub * sub)
    if max_rows_per_block is not None:
        rt = min(rt, max(sub, (max_rows_per_block // sub) * sub))

    n_rounded = pl.cdiv(n, sub) * sub
    row_tile = min(rt, n_rounded)

    num_tc = _tpu_num_tensorcores()
    core_parallel = getattr(pltpu, "CORE_PARALLEL", None)
    arbitrary = getattr(pltpu, "ARBITRARY", "arbitrary")
    want_splits = 2 if (num_tc >= 2 and core_parallel is not None) else 1

    # Keep >= 2 row blocks per split whenever the data allows it, so block DMA
    # and compute overlap instead of a degenerate whole-table-then-compute.
    min_blocks = 2 * want_splits
    if n_rounded >= min_blocks * sub:
        row_tile = min(row_tile, max(sub, (n_rounded // min_blocks) // sub * sub))

    nb = pl.cdiv(n, row_tile)
    # Split row blocks across 2 TensorCores only when the split is exact and
    # each core gets >= 2 blocks; otherwise drop the split axis entirely.
    n_splits = 2 if (want_splits == 2 and nb % 2 == 0 and nb >= 4) else 1
    nb_per_split = nb // n_splits
    needs_mask = (n % row_tile) != 0

    kernel = functools.partial(
        _sum_pow_kernel, p=p, n=n, row_tile=row_tile, num_emb=num_emb,
        nb_per_split=nb_per_split, nb_total=nb, needs_mask=needs_mask,
        two_axes=(n_splits == 2))

    if n_splits == 2:
        grid = (n_splits, nb_per_split)
        in_spec = pl.BlockSpec((row_tile, d),
                               lambda c, j: (c * nb_per_split + j, 0))
        out_spec = pl.BlockSpec((1, num_emb), lambda c, j: (c, 0),
                                memory_space=pltpu.SMEM)
        dim_sem = (core_parallel, arbitrary)
    else:
        grid = (nb,)
        in_spec = pl.BlockSpec((row_tile, d), lambda j: (j, 0))
        out_spec = pl.BlockSpec((1, num_emb), lambda j: (0, 0),
                                memory_space=pltpu.SMEM)
        dim_sem = ("arbitrary",)

    grid_spec = pltpu.PrefetchScalarGridSpec(
        num_scalar_prefetch=0,
        grid=grid,
        in_specs=[in_spec] * num_emb,
        out_specs=out_spec,
        scratch_shapes=[pltpu.VMEM((8, d), jnp.float32)] * num_emb,
    )

    p_int = p if isinstance(p, int) else 3
    cost = pl.CostEstimate(
        flops=num_emb * n * d * (p_int + 1),
        transcendentals=0,
        bytes_accessed=num_emb * n * d * itemsize + 4 * n_splits * num_emb,
    )

    out = pl.pallas_call(
        kernel,
        out_shape=jax.ShapeDtypeStruct((n_splits, num_emb), jnp.float32),
        grid_spec=grid_spec,
        compiler_params=pltpu.CompilerParams(
            dimension_semantics=dim_sem,
            vmem_limit_bytes=vmem_limit,
        ),
        cost_estimate=cost,
    )(*xs)

    # Combine the per-TensorCore partial sums in the wrapper (E scalars).
    return jnp.sum(out, axis=0)


def _as_2d(x):
    if x.ndim == 1:
        return x.reshape(1, -1)
    if x.ndim == 2:
        return x
    return x.reshape(-1, x.shape[-1])


def _fold_lane_dense(x):
    """Fold rows into lanes so the trailing dim is a multiple of 128.

    Free metadata reshape; valid because sum(|x|^p) is shape-agnostic.
    """
    n, d = x.shape
    if d % 128 == 0 or n <= 1:
        return x
    k = 128 // math.gcd(d, 128)
    if k > 1 and n % k == 0 and (n // k) >= 8:
        return x.reshape(n // k, k * d)
    return x


def emb_loss(*embeddings, norm=2, _max_rows_per_block=None):
    """JAX/Pallas equivalent of EmbLoss.forward(*embeddings)."""
    flat = [_fold_lane_dense(_as_2d(jnp.asarray(e))) for e in embeddings]

    # Group same-(shape, dtype) embeddings into one fused pallas_call each.
    groups = {}
    for f in flat:
        key = (tuple(f.shape), jnp.dtype(f.dtype).name)
        groups.setdefault(key, []).append(f)

    group_sums = [
        _sum_abs_pow(grp, p=norm, max_rows_per_block=_max_rows_per_block)
        for grp in groups.values()
    ]
    sums = group_sums[0] if len(group_sums) == 1 else jnp.concatenate(group_sums)

    if norm == 2:
        norms = jnp.sqrt(sums)
    elif norm == 1:
        norms = sums
    else:
        norms = sums ** (1.0 / norm)

    loss = jnp.sum(norms) / embeddings[-1].shape[0]
    return loss.reshape(1).astype(jnp.float32)


if __name__ == "__main__":
    key = jax.random.PRNGKey(0)
    k1, k2 = jax.random.split(key)

    # Small embedding batches consistent with EmbLoss usage: (batch, hidden).
    user_emb = jax.random.normal(k1, (8, 32), dtype=jnp.float32)
    item_emb = jax.random.normal(k2, (8, 32), dtype=jnp.float32)

    out = jax.block_until_ready(emb_loss(user_emb, item_emb, norm=2))
    ref = (jnp.linalg.norm(user_emb) + jnp.linalg.norm(item_emb)) / item_emb.shape[0]
    assert out.shape == (1,)
    assert jnp.allclose(out[0], ref, rtol=1e-5, atol=1e-5)

    # Ragged tail (mask hoisted to the single last block) + multi-block reduce.
    k3, k4 = jax.random.split(jax.random.fold_in(key, 3))
    big_u = jax.random.normal(k3, (1003, 64), dtype=jnp.float32)
    big_i = jax.random.normal(k4, (1003, 64), dtype=jnp.float32)
    out2 = jax.block_until_ready(
        emb_loss(big_u, big_i, norm=2, _max_rows_per_block=128))
    ref2 = (jnp.linalg.norm(big_u) + jnp.linalg.norm(big_i)) / big_i.shape[0]
    assert out2.shape == (1,)
    assert jnp.allclose(out2[0], ref2, rtol=1e-4, atol=1e-5)

    # Lane-dense fold path (d=64 -> 128), mixed-shape grouping, 3-D input.
    k5, k6, k7 = jax.random.split(jax.random.fold_in(key, 7), 3)
    a = jax.random.normal(k5, (64, 64), dtype=jnp.float32)
    b = jax.random.normal(k6, (64, 64), dtype=jnp.float32)
    c3 = jax.random.normal(k7, (4, 8, 32), dtype=jnp.float32)
    out3 = jax.block_until_ready(emb_loss(a, b, c3, norm=2))
    ref3 = (jnp.linalg.norm(a) + jnp.linalg.norm(b)
            + jnp.linalg.norm(c3.reshape(-1))) / c3.shape[0]
    assert out3.shape == (1,)
    assert jnp.allclose(out3[0], ref3, rtol=1e-4, atol=1e-5)

    print("KERNEL_OK")
</pallas_src>

<mosaic_0001>
module attributes {stable_mosaic.version = 11 : i64} {
  func.func @_sum_pow_kernel(%arg0: i32, %arg1: memref<8x32xf32, #tpu.memory_space<vmem>>, %arg2: memref<8x32xf32, #tpu.memory_space<vmem>>, %arg3: memref<1x2xf32, #tpu.memory_space<smem>>, %arg4: memref<8x32xf32, #tpu.memory_space<vmem>>, %arg5: memref<8x32xf32, #tpu.memory_space<vmem>>) attributes {dimension_semantics = [#tpu.dimension_semantics<arbitrary>], iteration_bounds = array<i64: 1>, scalar_prefetch = 0 : i64, scratch_operands = 2 : i64, tpu.core_type = #tpu.core_type<tc>, window_params = [{transform_indices = @transform_0, window_bounds = array<i64: 8, 32>}, {transform_indices = @transform_1, window_bounds = array<i64: 8, 32>}, {transform_indices = @transform_2, window_bounds = array<i64: 1, 2>}]} {
    %c0_i32 = arith.constant 0 : i32
    %0 = arith.cmpi eq, %arg0, %c0_i32 : i32
    %1 = arith.extui %0 : i1 to i32
    %c0_i32_0 = arith.constant 0 : i32
    %2 = arith.cmpi ne, %1, %c0_i32_0 : i32
    scf.if %2 {
      %cst_15 = arith.constant 0.000000e+00 : f32
      %20 = vector.broadcast %cst_15 : f32 to vector<8x32xf32>
      %c0_16 = arith.constant 0 : index
      %c0_17 = arith.constant 0 : index
      %21 = vector.load %arg4[%c0_16, %c0_17] : memref<8x32xf32, #tpu.memory_space<vmem>>, vector<8x32xf32>
      tpu.vector_store %arg4[%c0_16, %c0_17], %20 {strides = array<i32>} : memref<8x32xf32, #tpu.memory_space<vmem>>, vector<8x32xf32>,
      %cst_18 = arith.constant 0.000000e+00 : f32
      %22 = vector.broadcast %cst_18 : f32 to vector<8x32xf32>
      %c0_19 = arith.constant 0 : index
      %c0_20 = arith.constant 0 : index
      %23 = vector.load %arg5[%c0_19, %c0_20] : memref<8x32xf32, #tpu.memory_space<vmem>>, vector<8x32xf32>
      tpu.vector_store %arg5[%c0_19, %c0_20], %22 {strides = array<i32>} : memref<8x32xf32, #tpu.memory_space<vmem>>, vector<8x32xf32>,
    } else {
    }
    %c0 = arith.constant 0 : index
    %c0_1 = arith.constant 0 : index
    %3 = vector.load %arg1[%c0, %c0_1] : memref<8x32xf32, #tpu.memory_space<vmem>>, vector<8x32xf32>
    %4 = arith.mulf %3, %3 : vector<8x32xf32>
    %c0_2 = arith.constant 0 : index
    %c0_3 = arith.constant 0 : index
    %5 = vector.load %arg4[%c0_2, %c0_3] : memref<8x32xf32, #tpu.memory_space<vmem>>, vector<8x32xf32>
    %6 = vector.shape_cast %4 : vector<8x32xf32> to vector<1x8x32xf32>
    %cst = arith.constant dense<0.000000e+00> : vector<8x32xf32>
    %7 = vector.multi_reduction <add>, %6, %cst [0] : vector<1x8x32xf32> to vector<8x32xf32>
    %8 = arith.addf %5, %7 : vector<8x32xf32>
    %c0_4 = arith.constant 0 : index
    %c0_5 = arith.constant 0 : index
    %9 = vector.load %arg4[%c0_4, %c0_5] : memref<8x32xf32, #tpu.memory_space<vmem>>, vector<8x32xf32>
    tpu.vector_store %arg4[%c0_4, %c0_5], %8 {strides = array<i32>} : memref<8x32xf32, #tpu.memory_space<vmem>>, vector<8x32xf32>,
    %c0_6 = arith.constant 0 : index
    %c0_7 = arith.constant 0 : index
    %10 = vector.load %arg2[%c0_6, %c0_7] : memref<8x32xf32, #tpu.memory_space<vmem>>, vector<8x32xf32>
    %11 = arith.mulf %10, %10 : vector<8x32xf32>
    %c0_8 = arith.constant 0 : index
    %c0_9 = arith.constant 0 : index
    %12 = vector.load %arg5[%c0_8, %c0_9] : memref<8x32xf32, #tpu.memory_space<vmem>>, vector<8x32xf32>
    %13 = vector.shape_cast %11 : vector<8x32xf32> to vector<1x8x32xf32>
    %cst_10 = arith.constant dense<0.000000e+00> : vector<8x32xf32>
    %14 = vector.multi_reduction <add>, %13, %cst_10 [0] : vector<1x8x32xf32> to vector<8x32xf32>
    %15 = arith.addf %12, %14 : vector<8x32xf32>
    %c0_11 = arith.constant 0 : index
    %c0_12 = arith.constant 0 : index
    %16 = vector.load %arg5[%c0_11, %c0_12] : memref<8x32xf32, #tpu.memory_space<vmem>>, vector<8x32xf32>
    tpu.vector_store %arg5[%c0_11, %c0_12], %15 {strides = array<i32>} : memref<8x32xf32, #tpu.memory_space<vmem>>, vector<8x32xf32>,
    %c0_i32_13 = arith.constant 0 : i32
    %17 = arith.cmpi eq, %arg0, %c0_i32_13 : i32
    %18 = arith.extui %17 : i1 to i32
    %c0_i32_14 = arith.constant 0 : i32
    %19 = arith.cmpi ne, %18, %c0_i32_14 : i32
    scf.if %19 {
      %c0_15 = arith.constant 0 : index
      %c0_16 = arith.constant 0 : index
      %20 = vector.load %arg4[%c0_15, %c0_16] : memref<8x32xf32, #tpu.memory_space<vmem>>, vector<8x32xf32>
      %21 = vector.shape_cast %20 : vector<8x32xf32> to vector<1x8x32xf32>
      %cst_17 = arith.constant dense<0.000000e+00> : vector<1xf32>
      %22 = vector.multi_reduction <add>, %21, %cst_17 [1, 2] : vector<1x8x32xf32> to vector<1xf32>
      %23 = vector.shape_cast %22 : vector<1xf32> to vector<1x1x1xf32>
      %24 = vector.extract %23[0, 0, 0] : f32 from vector<1x1x1xf32>
      %c0_18 = arith.constant 0 : index
      %c0_19 = arith.constant 0 : index
      %25 = memref.load %arg3[%c0_18, %c0_19] : memref<1x2xf32, #tpu.memory_space<smem>>
      memref.store %24, %arg3[%c0_18, %c0_19] : memref<1x2xf32, #tpu.memory_space<smem>>
      %c0_20 = arith.constant 0 : index
      %c0_21 = arith.constant 0 : index
      %26 = vector.load %arg5[%c0_20, %c0_21] : memref<8x32xf32, #tpu.memory_space<vmem>>, vector<8x32xf32>
      %27 = vector.shape_cast %26 : vector<8x32xf32> to vector<1x8x32xf32>
      %cst_22 = arith.constant dense<0.000000e+00> : vector<1xf32>
      %28 = vector.multi_reduction <add>, %27, %cst_22 [1, 2] : vector<1x8x32xf32> to vector<1xf32>
      %29 = vector.shape_cast %28 : vector<1xf32> to vector<1x1x1xf32>
      %30 = vector.extract %29[0, 0, 0] : f32 from vector<1x1x1xf32>
      %c0_23 = arith.constant 0 : index
      %c1 = arith.constant 1 : index
      %31 = memref.load %arg3[%c0_23, %c1] : memref<1x2xf32, #tpu.memory_space<smem>>
      memref.store %30, %arg3[%c0_23, %c1] : memref<1x2xf32, #tpu.memory_space<smem>>
    } else {
    }
    return
  }
  func.func @transform_0(%arg0: i32) -> (i32, i32) {
    %c0_i32 = arith.constant 0 : i32
    %c0_i32_0 = arith.constant 0 : i32
    return %arg0, %c0_i32 : i32, i32
  }
  func.func @transform_1(%arg0: i32) -> (i32, i32) {
    %c0_i32 = arith.constant 0 : i32
    %c0_i32_0 = arith.constant 0 : i32
    return %arg0, %c0_i32 : i32, i32
  }
  func.func @transform_2(%arg0: i32) -> (i32, i32) {
    %c0_i32 = arith.constant 0 : i32
    %c0_i32_0 = arith.constant 0 : i32
    %c0_i32_1 = arith.constant 0 : i32
    return %c0_i32, %c0_i32_0 : i32, i32
  }
}

</mosaic_0001>

<bundles_post_ra>
// kernel: tpu_custom_call.1
= control target key start
LH: loop header
LB: loop body
LE: loop exit
PB: predicated region body
PF: predicated region fallthrough
CT: control target
= control target key end

     0   :  { %7 = vsyncpa [#allocation5], 0  ;;  %s214_s0 = inlined_call_operand.hbm [shape: f32[8,32], index: 0, kind: input, shape index: {}]   ;;  %s215_s1 = inlined_call_operand.hbm [shape: f32[8,32], index: 1, kind: input, shape index: {}]   ;;  %s216_s2 = inlined_call_operand.hbm [shape: f32[1,2], index: 2, kind: output, shape index: {}]  }
   0x1   :  { %8 = vsyncpa [#allocation8], 0 }
   0x2   :  { %9 = vsyncpa [#allocation6], 0  ;;  %s15_s11 = sshll.u32 %s214_s0, 4  ;;  %s180_s12 = smov [#allocation4]   ;;  %s16_s11 = int_to_ptr.hbm [resolvable:$true] %s15_s11 }
   0x3   :  { %s17_s13 = sshll.u32 %s180_s12, 4  ;;  %s26_s16 = sshll.u32 %s215_s1, 4  ;;  %s18_s13 = int_to_ptr.vmem [resolvable:$true] %s17_s13  ;;  %s27_s16 = int_to_ptr.hbm [resolvable:$true] %s26_s16 }
   0x4   :  { %20 = dma.hbm_to_vmem [thread:$0]  %s16_s11, 128, %s18_s13, [#allocation5]  }
   0x5   :  { %s181_s17 = smov [#allocation7]  }
   0x6   :  { %s28_s18 = sshll.u32 %s181_s17, 4  ;;  %s29_s18 = int_to_ptr.vmem [resolvable:$true] %s28_s18 }
   0x7   :  { %31 = dma.hbm_to_vmem [thread:$0]  %s27_s16, 128, %s29_s18, [#allocation8]  }
   0x8   :  { %174 = dma.done.wait [#allocation5], 128  }
   0x9   :  { %175 = vsyncadd [#allocation5], 4294967168 }
   0xa   :  { %176 = dma.done.wait [#allocation8], 128  }
   0xb   :  { %177 = vsyncadd [#allocation8], 4294967168  ;;  %vm44_vm0 = vcmask 261120   ;;  %v182_v0 = vmov 0.0   ;;  %v47_v1 = vld [vmem:[#allocation4] sm:$0xff]  ;;  %v54_v2 = vld [vmem:[#allocation7] sm:$0xff] }
   0xc   :  { %45 = vst.msk [vmem:[#allocation2] sm:$0xff] %vm44_vm0, %v182_v0  ;;  %v48_v3 = vmul.f32 %v47_v1, %v47_v1  ;;  %v55_v5 = vmul.f32 %v54_v2, %v54_v2  ;;  %s94_s20 = sshll.u32 %s216_s2, 4  ;;  %s183_s22 = smov [#allocation9]   ;;  %s95_s20 = int_to_ptr.hbm [resolvable:$true] %s94_s20 }
   0xd   :  { %46 = vst.msk [vmem:[#allocation3] sm:$0xff] %vm44_vm0, %v182_v0 }
  0x13   :  { %v49_v4 = vld [vmem:[#allocation2] sm:$0xff] }
  0x14   :  { %v56_v6 = vld [vmem:[#allocation3] sm:$0xff]  ;;  %v51_v7 = vadd.f32 %v49_v4, %v48_v3 }
  0x15   :  { %v58_v8 = vadd.f32 %v56_v6, %v55_v5 }
  0x16   :  { %53 = vst.msk [vmem:[#allocation2] sm:$0xff] %vm44_vm0, %v51_v7 }
  0x17   :  { %59 = vst.msk [vmem:[#allocation3] sm:$0xff] %vm44_vm0, %v58_v8 }
  0x1d   :  { %v63_v9 = vld [vmem:[#allocation2] sm:$0xff] }
  0x1e   :  { %v64_v10 = vsel %vm44_vm0, %v63_v9, 0.0  ;;  %v76_v11 = vld [vmem:[#allocation3] sm:$0xff] }
  0x1f   :  { %65 = vadd.xlane.f32.xlu0 %v64_v10  ;;  %v77_v12 = vsel %vm44_vm0, %v76_v11, 0.0 }
  0x27   :  { %78 = vadd.xlane.f32.xlu0 %v77_v12 }
  0x92   :  { %v66_v13 = vpop.xlane.xlu0 %65 }
  0x93   :  { %v67_v14 = vrot.slane %v66_v13, 4 }
  0x95   :  { %v68_v15 = vadd.f32 %v67_v14, %v66_v13 }
  0x97   :  { %v69_v16 = vrot.slane %v68_v15, 2 }
  0x99   :  { %v70_v17 = vadd.f32 %v69_v16, %v68_v15 }
  0x9a   :  { %v79_v18 = vpop.xlane.xlu0 %78 }
  0x9b   :  { %v80_v19 = vrot.slane %v79_v18, 4  ;;  %v71_v20 = vrot.slane %v70_v17, 1 }
  0x9d   :  { %v81_v21 = vadd.f32 %v80_v19, %v79_v18  ;;  %v72_v22 = vadd.f32 %v71_v20, %v70_v17 }
  0x9f   :  { %v82_v23 = vrot.slane %v81_v21, 2  ;;  %106 = vpush %v72_v22 }
  0xa1   :  { %v83_v24 = vadd.f32 %v82_v23, %v81_v21 }
  0xa3   :  { %v84_v25 = vrot.slane %v83_v24, 1 }
  0xa5   :  { %v85_v26 = vadd.f32 %v84_v25, %v83_v24 }
  0xa7   :  { %108 = vpush %v85_v26 }
  0xd0   :  { %s107_s0 = spop %106 }
  0xd1   :  { %75 = sst [smem:[#allocation9]] %s107_s0 }
  0xd8   :  { %s109_s21 = spop %108 }
  0xd9   :  { %88 = sst [smem:[#allocation9 + $0x1]] %s109_s21 }
  0xda   :  { %97 = dma.smem_to_hbm %s183_s22, 16, %s95_s20, [#allocation6]  }
  0xdb   :  { %178 = dma.done.wait [#allocation6], 16  }
  0xdc   :  { %179 = vsyncadd [#allocation6], 4294967280 }
  0xdd   :  { %102 = sfence }
  0xde   :  { %103 = vsyncpa [#allocation5], 1 }
  0xdf   :  { %104 = vsyncpa [#allocation8], 1 }
  0xe0   :  { %105 = vsyncpa [#allocation6], 1 }

</bundles_post_ra>
